<compile_context>
chip_gen: v5e
topology: v5e:2x2
jax: 0.10.0
libtpu: 0.0.40
codegen_flags: <defaults>
</compile_context>

<pallas_src>
import math

import jax
import jax.numpy as jnp
from jax.experimental import pallas as pl
from jax.experimental.pallas import tpu as pltpu

_LOG_2PI = math.log(2.0 * math.pi)
_LANES = 128
_SUBLANES = 8
_TARGET_ROW_TILE = 4096                 # (4096, 128) f32 = 2 MiB per input tile
_VMEM_LIMIT_BYTES = 48 * 1024 * 1024    # fits v7x (64 MiB phys) and v5e/v6e (128 MiB)
_MIN_KERNEL_ELEMS = _SUBLANES * _LANES  # below one (8,128) tile, plain XLA wins


def _cdiv(a: int, b: int) -> int:
    return -(-a // b)


def _loss_terms(mean_pred, var_pred, target):
    """Per-element Gaussian NLL in f32 (used for the fallback and ragged tail)."""
    mean = mean_pred.astype(jnp.float32)
    var = var_pred.astype(jnp.float32)
    tgt = target.astype(jnp.float32)
    var_s = jnp.maximum(var, 1e-6)
    diff = tgt - mean
    return 0.5 * (jnp.log(var_s) + diff * diff / var_s + _LOG_2PI)


def _make_kernel(row_tile: int, steps: int, total_blocks: int, need_gate: bool):
    """Builds the per-call kernel with static tiling parameters baked in."""

    def kernel(mean_ref, var_ref, tgt_ref, out_ref, acc_ref):
        c = pl.program_id(0)   # core-split axis ("parallel")
        s = pl.program_id(1)   # reduction axis ("arbitrary")

        @pl.when(s == 0)
        def _():
            acc_ref[...] = jnp.zeros_like(acc_ref)

        def accumulate():
            # Cast in-kernel: bf16/f16 inputs stream at native width from HBM.
            mean = mean_ref[...].astype(jnp.float32)
            var = var_ref[...].astype(jnp.float32)
            tgt = tgt_ref[...].astype(jnp.float32)
            var_s = jnp.maximum(var, 1e-6)          # torch.clamp(var, min=1e-6)
            diff = tgt - mean
            loss = 0.5 * (jnp.log(var_s) + diff * diff / var_s + _LOG_2PI)
            # Layout-preserving (row_tile,128)->(row_tile//8,8,128) reshape and
            # a sublane-group sum: pure VPU adds into a tiny (8,128) partial.
            acc_ref[...] += jnp.sum(
                loss.reshape(row_tile // _SUBLANES, _SUBLANES, _LANES), axis=0)

        if need_gate:
            # Odd block count split across 2 cores: the (single) out-of-range
            # step maps to a clamped duplicate block; skip its contribution.
            @pl.when(c * steps + s < total_blocks)
            def _():
                accumulate()
        else:
            accumulate()

        @pl.when(s == steps - 1)
        def _():
            # Single cross-lane/sublane collapse per core.
            out_ref[...] = jnp.sum(acc_ref[...]).reshape(1, 1, 1)

    return kernel


def _pallas_block_sum(mean2d, var2d, tgt2d, row_tile: int, total_blocks: int):
    """Sum of per-element losses over the first total_blocks*(row_tile,128) blocks."""
    num_splits = 2 if total_blocks >= 2 else 1       # v7x: 2 TensorCores
    steps = _cdiv(total_blocks, num_splits)
    need_gate = (num_splits * steps) != total_blocks

    if need_gate:
        def idx(c, s):
            return (jnp.minimum(c * steps + s, total_blocks - 1), 0)
    else:
        def idx(c, s):
            return (c * steps + s, 0)

    tile_spec = pl.BlockSpec((row_tile, _LANES), idx)
    kernel = _make_kernel(row_tile, steps, total_blocks, need_gate)

    partials = pl.pallas_call(
        kernel,
        out_shape=jax.ShapeDtypeStruct((num_splits, 1, 1), jnp.float32),
        grid_spec=pltpu.PrefetchScalarGridSpec(
            num_scalar_prefetch=0,
            grid=(num_splits, steps),
            in_specs=[tile_spec, tile_spec, tile_spec],
            out_specs=pl.BlockSpec((1, 1, 1), lambda c, s: (c, 0, 0)),
            scratch_shapes=[pltpu.VMEM((_SUBLANES, _LANES), jnp.float32)],
        ),
        compiler_params=pltpu.CompilerParams(
            dimension_semantics=("parallel", "arbitrary"),
            vmem_limit_bytes=_VMEM_LIMIT_BYTES,
        ),
    )(mean2d, var2d, tgt2d)
    return jnp.sum(partials)


def _nll_forward(mean_pred, var_pred, target, *,
                 row_tile_cap: int = _TARGET_ROW_TILE,
                 min_kernel_elems: int = _MIN_KERNEL_ELEMS):
    assert mean_pred.shape == var_pred.shape == target.shape
    n = mean_pred.size
    if n == 0:
        return jnp.array(jnp.nan, jnp.float32)

    # Small-input fallback: launch + per-step overhead would dominate.
    if n < max(min_kernel_elems, _SUBLANES * _LANES):
        return jnp.mean(_loss_terms(mean_pred, var_pred, target))

    mean_f = mean_pred.reshape(-1)
    var_f = var_pred.reshape(-1)
    tgt_f = target.reshape(-1)

    # ---- static tiling plan -------------------------------------------------
    rem = n % _LANES                    # elements past the last full lane-row
    n_lane = n - rem
    flat_rows = n_lane // _LANES
    row_tile_cap = max(_SUBLANES, (int(row_tile_cap) // _SUBLANES) * _SUBLANES)
    row_tile = min(row_tile_cap, (flat_rows // _SUBLANES) * _SUBLANES)
    total_blocks = flat_rows // row_tile
    n_main = total_blocks * row_tile * _LANES   # elements covered by the kernel

    # ---- lane-dense 2D views (no dtype change; zero copy when lane-aligned) -
    def to2d(x):
        if rem == 0:
            return x.reshape(flat_rows, _LANES)            # pure reshape, no copy
        # Rare non-lane-aligned case: one prefix slice per input (the kernel
        # still never requires whole-array zero-padding / concatenation).
        return x[:n_lane].reshape(flat_rows, _LANES)

    main_sum = _pallas_block_sum(to2d(mean_f), to2d(var_f), to2d(tgt_f),
                                 row_tile, total_blocks)

    # Ragged tail (< row_tile*128 + 128 elements): tiny plain-jnp sum.
    if n_main < n:
        main_sum = main_sum + jnp.sum(
            _loss_terms(mean_f[n_main:], var_f[n_main:], tgt_f[n_main:]))

    return main_sum / n


@jax.custom_vjp
def nll_loss_gaussian(mean_pred: jax.Array, var_pred: jax.Array,
                      target: jax.Array) -> jax.Array:
    """Gaussian NLL loss (scalar mean); hot path computed in a Pallas kernel."""
    return _nll_forward(mean_pred, var_pred, target)


def _nll_fwd(mean_pred, var_pred, target):
    return _nll_forward(mean_pred, var_pred, target), (mean_pred, var_pred, target)


def _nll_bwd(residuals, g):
    mean_pred, var_pred, target = residuals
    n = mean_pred.size
    m = mean_pred.astype(jnp.float32)
    v = var_pred.astype(jnp.float32)
    t = target.astype(jnp.float32)
    var_s = jnp.maximum(v, 1e-6)
    inv = 1.0 / var_s
    diff = t - m
    scale = g.astype(jnp.float32) / n
    d_mean = scale * (-diff * inv)
    d_tgt = scale * (diff * inv)
    d_var = jnp.where(v >= 1e-6, scale * 0.5 * (inv - diff * diff * inv * inv), 0.0)
    return (d_mean.astype(mean_pred.dtype), d_var.astype(var_pred.dtype),
            d_tgt.astype(target.dtype))


nll_loss_gaussian.defvjp(_nll_fwd, _nll_bwd)


def _reference(mean_pred, var_pred, target):
    var_s = jnp.maximum(var_pred.astype(jnp.float32), 1e-6)
    diff = target.astype(jnp.float32) - mean_pred.astype(jnp.float32)
    loss = 0.5 * (jnp.log(var_s) + diff * diff / var_s + _LOG_2PI)
    return jnp.mean(loss)


if __name__ == "__main__":
    key = jax.random.PRNGKey(0)
    k1, k2, k3 = jax.random.split(key, 3)

    # 1) Lane-aligned probabilistic-NN head: (2,4,16,16) = 2048 elements.
    shape = (2, 4, 16, 16)
    mean_pred = jax.random.normal(k1, shape, dtype=jnp.float32)
    var_pred = jnp.abs(jax.random.normal(k2, shape, dtype=jnp.float32)) * 0.5 + 0.05
    target = jax.random.normal(k3, shape, dtype=jnp.float32)
    # Exercise the clamp branch (numerically tame: diff = 0 at that element).
    var_pred = var_pred.at[0, 0, 0, 0].set(1e-9)
    target = target.at[0, 0, 0, 0].set(mean_pred[0, 0, 0, 0])

    out = jax.block_until_ready(jax.jit(nll_loss_gaussian)(mean_pred, var_pred, target))
    ref = _reference(mean_pred, var_pred, target)
    assert jnp.allclose(out, ref, rtol=1e-5, atol=1e-5), (out, ref)

    # 2) Non-lane-aligned (ragged) input -> kernel on aligned prefix + jnp tail.
    shape2 = (3, 7, 65)   # 1365 elements, 1365 % 128 = 85
    m2 = jax.random.normal(k1, shape2, dtype=jnp.float32)
    v2 = jnp.abs(jax.random.normal(k2, shape2, dtype=jnp.float32)) * 0.3 + 0.01
    t2 = jax.random.normal(k3, shape2, dtype=jnp.float32)
    out2 = jax.block_until_ready(nll_loss_gaussian(m2, v2, t2))
    ref2 = _reference(m2, v2, t2)
    assert jnp.allclose(out2, ref2, rtol=1e-5, atol=1e-5), (out2, ref2)

    # 3) Multi-block, odd block count + 2-way split (clamped index_map / gated
    #    accumulate) exercised via a small row-tile override.
    shape3 = (8, 409)     # 3272 elements -> 25 lane-rows -> 3 blocks of 8 rows + tail
    m3 = jax.random.normal(k1, shape3, dtype=jnp.float32)
    v3 = jnp.abs(jax.random.normal(k2, shape3, dtype=jnp.float32)) * 0.7 + 0.01
    t3 = jax.random.normal(k3, shape3, dtype=jnp.float32)
    out3 = jax.block_until_ready(_nll_forward(m3, v3, t3, row_tile_cap=8))
    ref3 = _reference(m3, v3, t3)
    assert jnp.allclose(out3, ref3, rtol=1e-5, atol=1e-5), (out3, ref3)

    # 4) Tiny input -> plain-XLA fallback (no kernel launch).
    shape4 = (3, 5, 7)
    m4 = jax.random.normal(k1, shape4, dtype=jnp.float32)
    v4 = jnp.abs(jax.random.normal(k2, shape4, dtype=jnp.float32)) * 0.3 + 0.01
    t4 = jax.random.normal(k3, shape4, dtype=jnp.float32)
    out4 = jax.block_until_ready(nll_loss_gaussian(m4, v4, t4))
    ref4 = _reference(m4, v4, t4)
    assert jnp.allclose(out4, ref4, rtol=1e-5, atol=1e-5), (out4, ref4)

    # 5) Gradient check for the custom VJP (training-time usage).
    g_k = jax.grad(nll_loss_gaussian, argnums=(0, 1, 2))(mean_pred, var_pred, target)
    g_r = jax.grad(_reference, argnums=(0, 1, 2))(mean_pred, var_pred, target)
    for a, b in zip(g_k, g_r):
        assert jnp.allclose(a, b, rtol=1e-5, atol=1e-5), (a, b)

    print("KERNEL_OK")
</pallas_src>

<mosaic_0001>
module attributes {stable_mosaic.version = 11 : i64} {
  func.func @kernel(%arg0: i32, %arg1: i32, %arg2: memref<16x128xf32, #tpu.memory_space<vmem>>, %arg3: memref<16x128xf32, #tpu.memory_space<vmem>>, %arg4: memref<16x128xf32, #tpu.memory_space<vmem>>, %arg5: memref<1x1x1xf32, #tpu.memory_space<vmem>>, %arg6: memref<8x128xf32, #tpu.memory_space<vmem>>) attributes {dimension_semantics = [#tpu.dimension_semantics<parallel>, #tpu.dimension_semantics<arbitrary>], iteration_bounds = array<i64: 1, 1>, scalar_prefetch = 0 : i64, scratch_operands = 1 : i64, tpu.core_type = #tpu.core_type<tc>, window_params = [{transform_indices = @transform_0, window_bounds = array<i64: 16, 128>}, {transform_indices = @transform_1, window_bounds = array<i64: 16, 128>}, {transform_indices = @transform_2, window_bounds = array<i64: 16, 128>}, {transform_indices = @transform_3, window_bounds = array<i64: 1, 1, 1>}]} {
    %c0_i32 = arith.constant 0 : i32
    %0 = arith.cmpi eq, %arg1, %c0_i32 : i32
    %1 = arith.extui %0 : i1 to i32
    %c0_i32_0 = arith.constant 0 : i32
    %2 = arith.cmpi ne, %1, %c0_i32_0 : i32
    scf.if %2 {
      %cst_15 = arith.constant 0.000000e+00 : f32
      %25 = vector.broadcast %cst_15 : f32 to vector<8x128xf32>
      %c0_16 = arith.constant 0 : index
      %c0_17 = arith.constant 0 : index
      %26 = vector.load %arg6[%c0_16, %c0_17] : memref<8x128xf32, #tpu.memory_space<vmem>>, vector<8x128xf32>
      tpu.vector_store %arg6[%c0_16, %c0_17], %25 {strides = array<i32>} : memref<8x128xf32, #tpu.memory_space<vmem>>, vector<8x128xf32>,
    } else {
    }
    %c0 = arith.constant 0 : index
    %c0_1 = arith.constant 0 : index
    %3 = vector.load %arg2[%c0, %c0_1] : memref<16x128xf32, #tpu.memory_space<vmem>>, vector<16x128xf32>
    %c0_2 = arith.constant 0 : index
    %c0_3 = arith.constant 0 : index
    %4 = vector.load %arg3[%c0_2, %c0_3] : memref<16x128xf32, #tpu.memory_space<vmem>>, vector<16x128xf32>
    %c0_4 = arith.constant 0 : index
    %c0_5 = arith.constant 0 : index
    %5 = vector.load %arg4[%c0_4, %c0_5] : memref<16x128xf32, #tpu.memory_space<vmem>>, vector<16x128xf32>
    %cst = arith.constant 9.99999997E-7 : f32
    %6 = vector.broadcast %cst : f32 to vector<16x128xf32>
    %7 = arith.maximumf %4, %6 : vector<16x128xf32>
    %8 = arith.subf %5, %3 : vector<16x128xf32>
    %9 = math.log %7 : vector<16x128xf32>
    %10 = arith.mulf %8, %8 : vector<16x128xf32>
    %11 = arith.divf %10, %7 : vector<16x128xf32>
    %12 = arith.addf %9, %11 : vector<16x128xf32>
    %cst_6 = arith.constant 1.83787704 : f32
    %13 = vector.broadcast %cst_6 : f32 to vector<16x128xf32>
    %14 = arith.addf %12, %13 : vector<16x128xf32>
    %cst_7 = arith.constant 5.000000e-01 : f32
    %15 = vector.broadcast %cst_7 : f32 to vector<16x128xf32>
    %16 = arith.mulf %15, %14 : vector<16x128xf32>
    %c0_8 = arith.constant 0 : index
    %c0_9 = arith.constant 0 : index
    %17 = vector.load %arg6[%c0_8, %c0_9] : memref<8x128xf32, #tpu.memory_space<vmem>>, vector<8x128xf32>
    %18 = vector.shape_cast %16 : vector<16x128xf32> to vector<2x8x128xf32>
    %cst_10 = arith.constant dense<0.000000e+00> : vector<8x128xf32>
    %19 = vector.multi_reduction <add>, %18, %cst_10 [0] : vector<2x8x128xf32> to vector<8x128xf32>
    %20 = arith.addf %17, %19 : vector<8x128xf32>
    %c0_11 = arith.constant 0 : index
    %c0_12 = arith.constant 0 : index
    %21 = vector.load %arg6[%c0_11, %c0_12] : memref<8x128xf32, #tpu.memory_space<vmem>>, vector<8x128xf32>
    tpu.vector_store %arg6[%c0_11, %c0_12], %20 {strides = array<i32>} : memref<8x128xf32, #tpu.memory_space<vmem>>, vector<8x128xf32>,
    %c0_i32_13 = arith.constant 0 : i32
    %22 = arith.cmpi eq, %arg1, %c0_i32_13 : i32
    %23 = arith.extui %22 : i1 to i32
    %c0_i32_14 = arith.constant 0 : i32
    %24 = arith.cmpi ne, %23, %c0_i32_14 : i32
    scf.if %24 {
      %c0_15 = arith.constant 0 : index
      %c0_16 = arith.constant 0 : index
      %25 = vector.load %arg6[%c0_15, %c0_16] : memref<8x128xf32, #tpu.memory_space<vmem>>, vector<8x128xf32>
      %26 = vector.shape_cast %25 : vector<8x128xf32> to vector<1x8x128xf32>
      %cst_17 = arith.constant dense<0.000000e+00> : vector<1xf32>
      %27 = vector.multi_reduction <add>, %26, %cst_17 [1, 2] : vector<1x8x128xf32> to vector<1xf32>
      %28 = vector.shape_cast %27 : vector<1xf32> to vector<1x1x1xf32>
      %29 = vector.extract %28[0, 0, 0] : f32 from vector<1x1x1xf32>
      %30 = vector.broadcast %29 : f32 to vector<1x1x1xf32>
      %c0_18 = arith.constant 0 : index
      %c0_19 = arith.constant 0 : index
      %c0_20 = arith.constant 0 : index
      %31 = vector.load %arg5[%c0_18, %c0_19, %c0_20] : memref<1x1x1xf32, #tpu.memory_space<vmem>>, vector<1x1x1xf32>
      tpu.vector_store %arg5[%c0_18, %c0_19, %c0_20], %30 {strides = array<i32>} : memref<1x1x1xf32, #tpu.memory_space<vmem>>, vector<1x1x1xf32>,
    } else {
    }
    return
  }
  func.func @transform_0(%arg0: i32, %arg1: i32) -> (i32, i32) {
    %c1_i32 = arith.constant 1 : i32
    %0 = arith.muli %arg0, %c1_i32 : i32
    %1 = arith.addi %0, %arg1 : i32
    %c0_i32 = arith.constant 0 : i32
    %c0_i32_0 = arith.constant 0 : i32
    return %1, %c0_i32 : i32, i32
  }
  func.func @transform_1(%arg0: i32, %arg1: i32) -> (i32, i32) {
    %c1_i32 = arith.constant 1 : i32
    %0 = arith.muli %arg0, %c1_i32 : i32
    %1 = arith.addi %0, %arg1 : i32
    %c0_i32 = arith.constant 0 : i32
    %c0_i32_0 = arith.constant 0 : i32
    return %1, %c0_i32 : i32, i32
  }
  func.func @transform_2(%arg0: i32, %arg1: i32) -> (i32, i32) {
    %c1_i32 = arith.constant 1 : i32
    %0 = arith.muli %arg0, %c1_i32 : i32
    %1 = arith.addi %0, %arg1 : i32
    %c0_i32 = arith.constant 0 : i32
    %c0_i32_0 = arith.constant 0 : i32
    return %1, %c0_i32 : i32, i32
  }
  func.func @transform_3(%arg0: i32, %arg1: i32) -> (i32, i32, i32) {
    %c0_i32 = arith.constant 0 : i32
    %c0_i32_0 = arith.constant 0 : i32
    %c0_i32_1 = arith.constant 0 : i32
    return %arg0, %c0_i32, %c0_i32_0 : i32, i32, i32
  }
}

</mosaic_0001>

<bundles_post_ra>
// kernel: nll_loss_gaussian.1
= control target key start
LH: loop header
LB: loop body
LE: loop exit
PB: predicated region body
PF: predicated region fallthrough
CT: control target
= control target key end

     0   :  { %s277_s0 = inlined_call_operand.vmem [shape: f32[16,128], index: 0, kind: input, shape index: {}]   ;;  %s278_s1 = inlined_call_operand.vmem [shape: f32[16,128], index: 1, kind: input, shape index: {}]   ;;  %s279_s2 = inlined_call_operand.vmem [shape: f32[16,128], index: 2, kind: input, shape index: {}]   ;;  %s280_s3 = inlined_call_operand.hbm [shape: f32[1,1,1], index: 3, kind: output, shape index: {}]  }
   0x1   :  { %v88_v0 = vld [vmem:[%s278_s1] sm:$0xff]  ;;  %v89_v1 = vld [vmem:[%s278_s1 + $0x8] sm:$0xff] }
   0x2   :  { %v92_v2 = vmax.f32 %v88_v0, 1e-06  ;;  %v93_v3 = vmax.f32 %v89_v1, 1e-06 }
   0x3   :  { %8 = vsyncpa [#allocation4], 0  ;;  %v86_v4 = vld [vmem:[%s277_s0] sm:$0xff]  ;;  %v87_v6 = vld [vmem:[%s277_s0 + $0x8] sm:$0xff]  ;;  %s229_s0 = smov [#allocation3]   ;;  %s165_s25 = sshll.u32 %s280_s3, 4  ;;  %s166_s25 = int_to_ptr.hbm [resolvable:$true] %s165_s25 }
   0x4   :  { %195 = vrcp.f32 %v92_v2  ;;  %v90_v5 = vld [vmem:[%s279_s2] sm:$0xff]  ;;  %v91_v7 = vld [vmem:[%s279_s2 + $0x8] sm:$0xff]  ;;  %vm107_vm0 = vweird.f32 %v92_v2  ;;  %v113_v13 = vand.u32 2147483648, %v92_v2  ;;  %v111_v16 = vand.u32 2147483647, %v92_v2  ;;  %s163_s1 = sshll.u32 %s229_s0, 4  ;;  %s164_s1 = int_to_ptr.vmem [resolvable:$true] %s163_s1 }
   0x5   :  { %197 = vrcp.f32 %v93_v3  ;;  %v94_v10 = vsub.f32 %v90_v5, %v86_v4  ;;  %v95_v12 = vsub.f32 %v91_v7, %v87_v6  ;;  %v128_v17 = vand.u32 2147483648, %v93_v3 }
   0x6   :  { %199 = vlog2.f32 %v92_v2  ;;  %vm122_vm2 = vweird.f32 %v93_v3  ;;  %v126_v19 = vand.u32 2147483647, %v93_v3  ;;  %v114_v23 = vor.u32 1.1754944e-38, %v113_v13 }
   0x7   :  { %201 = vlog2.f32 %v93_v3  ;;  %v100_v26 = vmul.f32 %v94_v10, %v94_v10  ;;  %vm112_vm5 = vcmp.eq.f32.partialorder %v111_v16, 8.507059e+37  ;;  %v129_v28 = vor.u32 1.1754944e-38, %v128_v17 }
   0x8   :  { %v101_v29 = vmul.f32 %v95_v12, %v95_v12  ;;  %vm127_vm7 = vcmp.eq.f32.partialorder %v126_v19, 8.507059e+37  ;;  %vm156_vm8 = vcmask 0  }
   0xa   :  { %v196_v8 = vpop.eup %195 }
   0xb   :  { %v198_v9 = vpop.eup %197  ;;  %v103_v11 = vmul.f32 %v196_v8, %v92_v2  ;;  %vm108_vm1 = vweird.f32 %v196_v8 }
   0xc   :  { %v118_v14 = vmul.f32 %v198_v9, %v93_v3  ;;  %vm123_vm3 = vweird.f32 %v198_v9  ;;  %v200_v21 = vpop.eup %199  ;;  %vm268_vm4 = vmor %vm107_vm0, %vm108_vm1 }
   0xd   :  { %v104_v15 = vsub.f32 1.0, %v103_v11  ;;  %v202_v25 = vpop.eup %201  ;;  %vm124_vm6 = vmor %vm122_vm2, %vm123_vm3  ;;  %v97_v31 = vmul.f32 0.6931472, %v200_v21 }
   0xe   :  { %v119_v18 = vsub.f32 1.0, %v118_v14  ;;  %v99_v33 = vmul.f32 0.6931472, %v202_v25 }
   0xf   :  { %v105_v20 = vmul.f32 %v196_v8, %v104_v15 }
  0x10   :  { %v120_v24 = vmul.f32 %v198_v9, %v119_v18 }
  0x11   :  { %v106_v27 = vadd.f32 %v196_v8, %v105_v20 }
  0x12   :  { %v121_v30 = vadd.f32 %v198_v9, %v120_v24 }
  0x13   :  { %v110_v32 = vsel %vm268_vm4, %v196_v8, %v106_v27 }
  0x14   :  { %v115_v34 = vsel %vm112_vm5, %v114_v23, %v110_v32  ;;  %v125_v35 = vsel %vm124_vm6, %v198_v9, %v121_v30 }
  0x15   :  { %v116_v36 = vmul.f32 %v115_v34, %v100_v26  ;;  %v130_v37 = vsel %vm127_vm7, %v129_v28, %v125_v35 }
  0x16   :  { %v131_v38 = vmul.f32 %v130_v37, %v101_v29 }
  0x17   :  { %v132_v39 = vadd.f32 %v116_v36, %v97_v31 }
  0x18   :  { %v133_v40 = vadd.f32 %v131_v38, %v99_v33 }
  0x19   :  { %v134_v41 = vadd.f32 1.837877, %v132_v39 }
  0x1a   :  { %v135_v42 = vadd.f32 1.837877, %v133_v40 }
  0x1b   :  { %v136_v43 = vmul.f32 0.5, %v134_v41 }
  0x1c   :  { %v137_v44 = vmul.f32 0.5, %v135_v42 }
  0x1e   :  { %v139_v45 = vadd.f32 %v137_v44, %v136_v43 }
  0x20   :  { %146 = vadd.xlane.f32.xlu0 %v139_v45 }
  0x93   :  { %v147_v46 = vpop.xlane.xlu0 %146 }
  0x94   :  { %v148_v47 = vrot.slane %v147_v46, 4 }
  0x96   :  { %v149_v48 = vadd.f32 %v148_v47, %v147_v46 }
  0x98   :  { %v150_v49 = vrot.slane %v149_v48, 2 }
  0x9a   :  { %v151_v50 = vadd.f32 %v150_v49, %v149_v48 }
  0x9c   :  { %v152_v51 = vrot.slane %v151_v50, 1 }
  0x9e   :  { %v153_v52 = vadd.f32 %v152_v51, %v151_v50 }
  0xa0   :  { %192 = vpush %v153_v52 }
  0xd1   :  { %s193_s26 = spop %192 }
  0xd2   :  { %v155_v53 = vstv %s193_s26 }
  0xd3   :  { %157 = vst.msk [vmem:[#allocation3] sm:$0x1] %vm156_vm8, %v155_v53 }
  0xd4   :  { %168 = dma.vmem_to_hbm [thread:$0]  %s164_s1, 16, %s166_s25, [#allocation4]  }
  0xd5   :  { %227 = dma.done.wait [#allocation4], 16  }
  0xd6   :  { %228 = vsyncadd [#allocation4], 4294967280 }
  0xd7   :  { %173 = vsyncpa [#allocation4], 1 }

</bundles_post_ra>
